<compile_context>
chip_gen: v7x
topology: tpu7x:2x2x1
jax: 0.10.0
libtpu: 0.0.40
codegen_flags: <defaults>
</compile_context>

<pallas_src>
import functools

import jax
import jax.numpy as jnp
from jax.experimental import pallas as pl
from jax.experimental.pallas import tpu as pltpu

LANES = 128
SUBLANES = 8


def _focal_kernel(x_ref, t_ref, o_ref, acc_ref, *,
                  alpha, gamma, total, tile_rows, steps_per_slab):
    s = pl.program_id(0)   # parallel slab axis
    i = pl.program_id(1)   # reduction (arbitrary) axis

    @pl.when(i == 0)
    def _():
        acc_ref[...] = jnp.zeros_like(acc_ref)

    x = x_ref[...].astype(jnp.float32)
    t = t_ref[...].astype(jnp.float32)

    # Stable log-sigmoid / softplus formulation (no inf/NaN for saturated x):
    #   sp        = softplus(-x) = max(-x, 0) + log(1 + exp(-|x|))
    #   log_pt    = log(sigmoid(x))     = -sp
    #   log_1m_pt = log(1 - sigmoid(x)) = -x - sp
    #   pt        = exp(log_pt)
    e = jnp.exp(-jnp.abs(x))                       # EUP
    sp = jnp.maximum(-x, 0.0) + jnp.log(1.0 + e)   # EUP (log); log1p-equivalent, error negligible
    log_pt = -sp
    log_1m_pt = -x - sp
    pt = jnp.exp(log_pt)                           # EUP
    one_m_pt = 1.0 - pt

    if gamma == 2:
        w_pos = one_m_pt * one_m_pt
        w_neg = pt * pt
    else:
        # TODO(synk): non-default gamma falls back to pow (extra EUP work).
        w_pos = one_m_pt ** gamma
        w_neg = pt ** gamma

    loss = ((-alpha) * w_pos * t * log_pt
            + (-(1.0 - alpha)) * w_neg * (1.0 - t) * log_1m_pt)

    # Mask out padded tail elements (flat element index >= total).
    base_row = (s * steps_per_slab + i) * tile_rows
    row_ids = base_row + jax.lax.broadcasted_iota(jnp.int32, loss.shape, 0)
    lane_ids = jax.lax.broadcasted_iota(jnp.int32, loss.shape, 1)
    flat = row_ids * LANES + lane_ids
    loss = jnp.where(flat < total, loss, 0.0)

    # Pure vreg-wise accumulation into the persistent (8, 128) scratch.
    acc_ref[...] += loss.reshape(-1, SUBLANES, LANES).sum(axis=0)

    # One cross-sublane reduce per slab, written to a lane-dense (1, 128) row.
    @pl.when(i == steps_per_slab - 1)
    def _():
        o_ref[...] = jnp.sum(acc_ref[...], axis=0, keepdims=True)


def bce_focal_loss(_input, target, *, gamma=2, alpha=0.6,
                   reduction="elementwise_mean", tile_rows=1024):
    """BCE focal loss (matches BCEFocalLoss.forward). Inputs: any (same) shape."""
    assert _input.shape == target.shape
    total = _input.size

    rows = pl.cdiv(total, LANES)
    rows8 = ((rows + SUBLANES - 1) // SUBLANES) * SUBLANES
    tile = max(SUBLANES, (min(tile_rows, rows8) // SUBLANES) * SUBLANES)

    # Two independent slabs when the input is large enough -> both TCs on v7x.
    n_slabs = 2 if rows8 >= 2 * tile else 1
    steps = pl.cdiv(rows8, n_slabs * tile)
    padded_rows = n_slabs * steps * tile
    pad = padded_rows * LANES - total

    x_flat = _input.reshape(-1)
    t_flat = target.reshape(-1)
    if pad:
        x_flat = jnp.pad(x_flat, (0, pad))
        t_flat = jnp.pad(t_flat, (0, pad))
    x2 = x_flat.reshape(padded_rows, LANES)
    t2 = t_flat.reshape(padded_rows, LANES)

    kern = functools.partial(
        _focal_kernel, alpha=float(alpha), gamma=gamma, total=total,
        tile_rows=tile, steps_per_slab=steps)

    bytes_in = x2.size * x2.dtype.itemsize + t2.size * t2.dtype.itemsize
    cost = pl.CostEstimate(flops=18 * total,
                           transcendentals=3 * total,
                           bytes_accessed=bytes_in + n_slabs * LANES * 4)

    partials = pl.pallas_call(
        kern,
        out_shape=jax.ShapeDtypeStruct((n_slabs, LANES), jnp.float32),
        grid_spec=pltpu.PrefetchScalarGridSpec(
            num_scalar_prefetch=0,
            grid=(n_slabs, steps),
            in_specs=[
                pl.BlockSpec((tile, LANES), lambda s, i: (s * steps + i, 0)),
                pl.BlockSpec((tile, LANES), lambda s, i: (s * steps + i, 0)),
            ],
            out_specs=pl.BlockSpec((1, LANES), lambda s, i: (s, 0)),
            scratch_shapes=[pltpu.VMEM((SUBLANES, LANES), jnp.float32)],
        ),
        compiler_params=pltpu.CompilerParams(
            dimension_semantics=("parallel", "arbitrary")),
        cost_estimate=cost,
    )(x2, t2)

    loss_sum = jnp.sum(partials)
    if reduction == "elementwise_mean":
        return loss_sum / jnp.float32(total)
    elif reduction == "sum":
        return loss_sum
    return loss_sum  # TODO(synk): 'none' reduction (per-element output) not exposed here.


def _reference(_input, target, gamma=2, alpha=0.6):
    pt = jax.nn.sigmoid(_input.astype(jnp.float32))
    t = target.astype(jnp.float32)
    loss = (-alpha * (1 - pt) ** gamma * t * jnp.log(pt)
            - (1 - alpha) * pt ** gamma * (1 - t) * jnp.log(1 - pt))
    return jnp.mean(loss)


if __name__ == "__main__":
    key = jax.random.PRNGKey(0)
    k1, k2 = jax.random.split(key)
    # NCHW-like shape: batch=2, channels=4, spatial=16x16 -> 2048 elems.
    shape = (2, 4, 16, 16)
    logits = jax.random.normal(k1, shape, dtype=jnp.float32)
    targets = (jax.random.uniform(k2, shape) > 0.5).astype(jnp.float32)

    loss = bce_focal_loss(logits, targets)
    jax.block_until_ready(loss)

    ref = _reference(logits, targets)
    assert jnp.allclose(loss, ref, rtol=1e-5, atol=1e-6), (loss, ref)
    print("KERNEL_OK")
</pallas_src>

<mosaic_0001>
module attributes {stable_mosaic.version = 11 : i64} {
  func.func @_focal_kernel(%arg0: i32, %arg1: i32, %arg2: memref<16x128xf32, #tpu.memory_space<vmem>>, %arg3: memref<16x128xf32, #tpu.memory_space<vmem>>, %arg4: memref<1x128xf32, #tpu.memory_space<vmem>>, %arg5: memref<8x128xf32, #tpu.memory_space<vmem>>) attributes {dimension_semantics = [#tpu.dimension_semantics<parallel>, #tpu.dimension_semantics<arbitrary>], iteration_bounds = array<i64: 1, 1>, scalar_prefetch = 0 : i64, scratch_operands = 1 : i64, tpu.core_type = #tpu.core_type<tc>, window_params = [{transform_indices = @transform_0, window_bounds = array<i64: 16, 128>}, {transform_indices = @transform_1, window_bounds = array<i64: 16, 128>}, {transform_indices = @transform_2, window_bounds = array<i64: 1, 128>}]} {
    %c0_i32 = arith.constant 0 : i32
    %0 = arith.cmpi eq, %arg1, %c0_i32 : i32
    %1 = arith.extui %0 : i1 to i32
    %c0_i32_0 = arith.constant 0 : i32
    %2 = arith.cmpi ne, %1, %c0_i32_0 : i32
    scf.if %2 {
      %cst_21 = arith.constant 0.000000e+00 : f32
      %60 = vector.broadcast %cst_21 : f32 to vector<8x128xf32>
      %c0_22 = arith.constant 0 : index
      %c0_23 = arith.constant 0 : index
      %61 = vector.load %arg5[%c0_22, %c0_23] : memref<8x128xf32, #tpu.memory_space<vmem>>, vector<8x128xf32>
      tpu.vector_store %arg5[%c0_22, %c0_23], %60 {strides = array<i32>} : memref<8x128xf32, #tpu.memory_space<vmem>>, vector<8x128xf32>,
    } else {
    }
    %c0 = arith.constant 0 : index
    %c0_1 = arith.constant 0 : index
    %3 = vector.load %arg2[%c0, %c0_1] : memref<16x128xf32, #tpu.memory_space<vmem>>, vector<16x128xf32>
    %c0_2 = arith.constant 0 : index
    %c0_3 = arith.constant 0 : index
    %4 = vector.load %arg3[%c0_2, %c0_3] : memref<16x128xf32, #tpu.memory_space<vmem>>, vector<16x128xf32>
    %5 = math.absf %3 : vector<16x128xf32>
    %cst = arith.constant 0.000000e+00 : f32
    %6 = vector.broadcast %cst : f32 to vector<16x128xf32>
    %7 = arith.subf %6, %5 : vector<16x128xf32>
    %8 = math.exp %7 : vector<16x128xf32>
    %cst_4 = arith.constant 0.000000e+00 : f32
    %9 = vector.broadcast %cst_4 : f32 to vector<16x128xf32>
    %10 = arith.subf %9, %3 : vector<16x128xf32>
    %cst_5 = arith.constant 0.000000e+00 : f32
    %11 = vector.broadcast %cst_5 : f32 to vector<16x128xf32>
    %12 = arith.maximumf %10, %11 : vector<16x128xf32>
    %cst_6 = arith.constant 1.000000e+00 : f32
    %13 = vector.broadcast %cst_6 : f32 to vector<16x128xf32>
    %14 = arith.addf %13, %8 : vector<16x128xf32>
    %15 = math.log %14 : vector<16x128xf32>
    %16 = arith.addf %12, %15 : vector<16x128xf32>
    %cst_7 = arith.constant 0.000000e+00 : f32
    %17 = vector.broadcast %cst_7 : f32 to vector<16x128xf32>
    %18 = arith.subf %17, %16 : vector<16x128xf32>
    %cst_8 = arith.constant 0.000000e+00 : f32
    %19 = vector.broadcast %cst_8 : f32 to vector<16x128xf32>
    %20 = arith.subf %19, %3 : vector<16x128xf32>
    %21 = arith.subf %20, %16 : vector<16x128xf32>
    %22 = math.exp %18 : vector<16x128xf32>
    %cst_9 = arith.constant 1.000000e+00 : f32
    %23 = vector.broadcast %cst_9 : f32 to vector<16x128xf32>
    %24 = arith.subf %23, %22 : vector<16x128xf32>
    %25 = arith.mulf %24, %24 : vector<16x128xf32>
    %26 = arith.mulf %22, %22 : vector<16x128xf32>
    %cst_10 = arith.constant -6.000000e-01 : f32
    %27 = vector.broadcast %cst_10 : f32 to vector<16x128xf32>
    %28 = arith.mulf %27, %25 : vector<16x128xf32>
    %29 = arith.mulf %28, %4 : vector<16x128xf32>
    %30 = arith.mulf %29, %18 : vector<16x128xf32>
    %cst_11 = arith.constant -4.000000e-01 : f32
    %31 = vector.broadcast %cst_11 : f32 to vector<16x128xf32>
    %32 = arith.mulf %31, %26 : vector<16x128xf32>
    %cst_12 = arith.constant 1.000000e+00 : f32
    %33 = vector.broadcast %cst_12 : f32 to vector<16x128xf32>
    %34 = arith.subf %33, %4 : vector<16x128xf32>
    %35 = arith.mulf %32, %34 : vector<16x128xf32>
    %36 = arith.mulf %35, %21 : vector<16x128xf32>
    %37 = arith.addf %30, %36 : vector<16x128xf32>
    %c1_i32 = arith.constant 1 : i32
    %38 = arith.muli %arg0, %c1_i32 : i32
    %39 = arith.addi %38, %arg1 : i32
    %c16_i32 = arith.constant 16 : i32
    %40 = arith.muli %39, %c16_i32 : i32
    %41 = tpu.iota {dimensions = array<i32: 0>} : vector<16x128xi32>
    %42 = vector.broadcast %40 : i32 to vector<16x128xi32>
    %43 = arith.addi %42, %41 : vector<16x128xi32>
    %44 = tpu.iota {dimensions = array<i32: 1>} : vector<16x128xi32>
    %c128_i32 = arith.constant 128 : i32
    %45 = vector.broadcast %c128_i32 : i32 to vector<16x128xi32>
    %46 = arith.muli %43, %45 : vector<16x128xi32>
    %47 = arith.addi %46, %44 : vector<16x128xi32>
    %c2048_i32 = arith.constant 2048 : i32
    %48 = vector.broadcast %c2048_i32 : i32 to vector<16x128xi32>
    %49 = arith.cmpi slt, %47, %48 : vector<16x128xi32>
    %cst_13 = arith.constant 0.000000e+00 : f32
    %50 = vector.broadcast %cst_13 : f32 to vector<16x128xf32>
    %51 = arith.select %49, %37, %50 : vector<16x128xi1>, vector<16x128xf32>
    %c0_14 = arith.constant 0 : index
    %c0_15 = arith.constant 0 : index
    %52 = vector.load %arg5[%c0_14, %c0_15] : memref<8x128xf32, #tpu.memory_space<vmem>>, vector<8x128xf32>
    %53 = vector.shape_cast %51 : vector<16x128xf32> to vector<2x8x128xf32>
    %cst_16 = arith.constant dense<0.000000e+00> : vector<8x128xf32>
    %54 = vector.multi_reduction <add>, %53, %cst_16 [0] : vector<2x8x128xf32> to vector<8x128xf32>
    %55 = arith.addf %52, %54 : vector<8x128xf32>
    %c0_17 = arith.constant 0 : index
    %c0_18 = arith.constant 0 : index
    %56 = vector.load %arg5[%c0_17, %c0_18] : memref<8x128xf32, #tpu.memory_space<vmem>>, vector<8x128xf32>
    tpu.vector_store %arg5[%c0_17, %c0_18], %55 {strides = array<i32>} : memref<8x128xf32, #tpu.memory_space<vmem>>, vector<8x128xf32>,
    %c0_i32_19 = arith.constant 0 : i32
    %57 = arith.cmpi eq, %arg1, %c0_i32_19 : i32
    %58 = arith.extui %57 : i1 to i32
    %c0_i32_20 = arith.constant 0 : i32
    %59 = arith.cmpi ne, %58, %c0_i32_20 : i32
    scf.if %59 {
      %c0_21 = arith.constant 0 : index
      %c0_22 = arith.constant 0 : index
      %60 = vector.load %arg5[%c0_21, %c0_22] : memref<8x128xf32, #tpu.memory_space<vmem>>, vector<8x128xf32>
      %cst_23 = arith.constant dense<0.000000e+00> : vector<128xf32>
      %61 = vector.multi_reduction <add>, %60, %cst_23 [0] : vector<8x128xf32> to vector<128xf32>
      %62 = vector.shape_cast %61 : vector<128xf32> to vector<1x128xf32>
      %c0_24 = arith.constant 0 : index
      %c0_25 = arith.constant 0 : index
      %63 = vector.load %arg4[%c0_24, %c0_25] : memref<1x128xf32, #tpu.memory_space<vmem>>, vector<1x128xf32>
      tpu.vector_store %arg4[%c0_24, %c0_25], %62 {strides = array<i32>} : memref<1x128xf32, #tpu.memory_space<vmem>>, vector<1x128xf32>,
    } else {
    }
    return
  }
  func.func @transform_0(%arg0: i32, %arg1: i32) -> (i32, i32) {
    %c1_i32 = arith.constant 1 : i32
    %0 = arith.muli %arg0, %c1_i32 : i32
    %1 = arith.addi %0, %arg1 : i32
    %c0_i32 = arith.constant 0 : i32
    %c0_i32_0 = arith.constant 0 : i32
    return %1, %c0_i32 : i32, i32
  }
  func.func @transform_1(%arg0: i32, %arg1: i32) -> (i32, i32) {
    %c1_i32 = arith.constant 1 : i32
    %0 = arith.muli %arg0, %c1_i32 : i32
    %1 = arith.addi %0, %arg1 : i32
    %c0_i32 = arith.constant 0 : i32
    %c0_i32_0 = arith.constant 0 : i32
    return %1, %c0_i32 : i32, i32
  }
  func.func @transform_2(%arg0: i32, %arg1: i32) -> (i32, i32) {
    %c0_i32 = arith.constant 0 : i32
    %c0_i32_0 = arith.constant 0 : i32
    return %arg0, %c0_i32 : i32, i32
  }
}

</mosaic_0001>

<bundles_post_ra>
// kernel: tpu_custom_call.1
= control target key start
LH: loop header
LB: loop body
LE: loop exit
PB: predicated region body
PF: predicated region fallthrough
CT: control target
= control target key end

     0   :  { %7 = vsyncpa [#allocation4], 0  ;;  %s305_s0 = inlined_call_operand.hbm [shape: f32[16,128], index: 0, kind: input, shape index: {}]   ;;  %s306_s1 = inlined_call_operand.hbm [shape: f32[16,128], index: 1, kind: input, shape index: {}]   ;;  %s307_s2 = inlined_call_operand.hbm [shape: f32[1,128], index: 2, kind: output, shape index: {}]  }
   0x1   :  { %8 = vsyncpa [#allocation7], 0 }
   0x2   :  { %9 = vsyncpa [#allocation5], 0  ;;  %s249_s9 = smov [#allocation3]   ;;  %s177_s13 = scalar_lea.hbm %s305_s0, 256 }
   0x3   :  { %s19_s10 = sshll.u32 %s249_s9, 4  ;;  %p178_p0 = scmp.ne.s32.totalorder %s305_s0, %s177_s13  ;;  %s20_s10 = int_to_ptr.vmem [resolvable:$true] %s19_s10 }
   0x4   :  { %p181_p1 = scmp.lt.u32.totalorder %s177_s13, %s305_s0 }
   0x6   :  { %p183_p2 = pnand %p181_p1, %p178_p0 }
   0x8   :  { %186 = shalt.err (!%p183_p2)
}
   0x9   :  { %s187_s18 = scalar_lea.vmem %s20_s10, 256  ;;  %p192_p4 = scmp.lt.s32.totalorder %s20_s10, %s20_s10 }
   0xa   :  { %p188_p3 = scmp.ne.s32.totalorder %s20_s10, %s187_s18  ;;  %p193_p5 = scmp.lt.s32.totalorder %s187_s18, %s187_s18 }
   0xc   :  { %p194_p6 = por %p193_p5, %p192_p4 }
   0xe   :  { %p195_p7 = pnand %p194_p6, %p188_p3 }
  0x10   :  { %198 = shalt.err (!%p195_p7)
}
  0x11   :  { %s250_s19 = smov 128   ;;  %s251_s20 = smov 8  }
  0x12   :  { %25 = dma.hbm_to_vmem [thread:$0]  %s305_s0, 256, %s20_s10, [#allocation4], %s250_s19, %s250_s19, %s251_s20  }
  0x13   :  { %s252_s23 = smov [#allocation6]   ;;  %s199_s27 = scalar_lea.hbm %s306_s1, 256 }
  0x14   :  { %s35_s24 = sshll.u32 %s252_s23, 4  ;;  %p200_p8 = scmp.ne.s32.totalorder %s306_s1, %s199_s27  ;;  %s36_s24 = int_to_ptr.vmem [resolvable:$true] %s35_s24 }
  0x15   :  { %p203_p9 = scmp.lt.u32.totalorder %s199_s27, %s306_s1 }
  0x17   :  { %p205_p10 = pnand %p203_p9, %p200_p8 }
  0x19   :  { %208 = shalt.err (!%p205_p10)
}
  0x1a   :  { %s209_s4 = scalar_lea.vmem %s36_s24, 256  ;;  %p214_p12 = scmp.lt.s32.totalorder %s36_s24, %s36_s24 }
  0x1b   :  { %p210_p11 = scmp.ne.s32.totalorder %s36_s24, %s209_s4  ;;  %p215_p13 = scmp.lt.s32.totalorder %s209_s4, %s209_s4 }
  0x1d   :  { %p216_p0 = por %p215_p13, %p214_p12 }
  0x1f   :  { %p217_p1 = pnand %p216_p0, %p210_p11 }
  0x21   :  { %220 = shalt.err (!%p217_p1)
}
  0x22   :  { %41 = dma.hbm_to_vmem [thread:$0]  %s306_s1, 256, %s36_s24, [#allocation7], %s250_s19, %s250_s19, %s251_s20  }
  0x23   :  { %243 = dma.done.wait [#allocation4], 256  }
  0x24   :  { %244 = vsyncadd [#allocation4], 4294967040 }
  0x25   :  { %245 = dma.done.wait [#allocation7], 256  }
  0x26   :  { %246 = vsyncadd [#allocation7], 4294967040  ;;  %v57_v0 = vld [vmem:[#allocation3] sm:$0xff]  ;;  %v58_v1 = vld [vmem:[#allocation3 + $0x8] sm:$0xff]  ;;  %v113_v26 = vlaneseq  ;;  %s253_s1 = smov [#allocation8]  }
  0x27   :  { %v61_v2 = vand.u32 2147483647, %v57_v0  ;;  %v62_v3 = vand.u32 2147483647, %v58_v1  ;;  %v69_v12 = vsub.f32 0.0, %v57_v0  ;;  %v70_v13 = vsub.f32 0.0, %v58_v1 }
  0x28   :  { %v114_v27 = vshrl.u32 %v113_v26, 7  ;;  %v59_v28 = vld [vmem:[#allocation6] sm:$0xff]  ;;  %v60_v29 = vld [vmem:[#allocation6 + $0x8] sm:$0xff]  ;;  %v120_v36 = vand.u32 127, %v113_v26  ;;  %s150_s6 = sshll.u32 %s253_s1, 4  ;;  %s151_s6 = int_to_ptr.vmem [resolvable:$true] %s150_s6 }
  0x29   :  { %v63_v4 = vsub.f32 0.0, %v61_v2  ;;  %v64_v5 = vsub.f32 0.0, %v62_v3  ;;  %v71_v14 = vmax.f32 %v69_v12, 0.0  ;;  %v72_v16 = vmax.f32 %v70_v13, 0.0  ;;  %s221_s7 = scalar_lea.vmem %s151_s6, 16  ;;  %s225_s8 = scalar_lea.vmem %s151_s6, 32 }
  0x2a   :  { %v115_v30 = vadd.s32 8, %v114_v27  ;;  %v103_v35 = vsub.f32 1.0, %v59_v28  ;;  %v104_v39 = vsub.f32 1.0, %v60_v29  ;;  %v121_v40 = vmul.u32 128, %v114_v27  ;;  %p222_p2 = scmp.ne.s32.totalorder %s151_s6, %s221_s7  ;;  %p226_p3 = scmp.lt.s32.totalorder %s151_s6, %s151_s6 }
  0x2b   :  { %v65_v6 = vmul.f32 1.442695, %v63_v4  ;;  %v67_v7 = vmul.f32 1.442695, %v64_v5  ;;  %p227_p4 = scmp.lt.s32.totalorder %s225_s8, %s221_s7 }
  0x2c   :  { %v122_v44 = vmul.u32 128, %v115_v30  ;;  %v123_v52 = vadd.s32 %v121_v40, %v120_v36 }
  0x2d   :  { %165 = vpow2.f32 %v65_v6  ;;  %p228_p5 = por %p227_p4, %p226_p3 }
  0x2e   :  { %167 = vpow2.f32 %v67_v7  ;;  %v124_v55 = vadd.s32 %v122_v44, %v120_v36  ;;  %vm125_vm0 = vcmp.lt.s32.totalorder %v123_v52, 2048 }
  0x2f   :  { %p229_p6 = pnand %p228_p5, %p222_p2 }
  0x30   :  { %vm126_vm1 = vcmp.lt.s32.totalorder %v124_v55, 2048 }
  0x37   :  { %v166_v8 = vpop.eup %165 }
  0x38   :  { %v168_v9 = vpop.eup %167  ;;  %v73_v10 = vadd.f32 1.0, %v166_v8 }
  0x39   :  { %v74_v11 = vadd.f32 1.0, %v168_v9 }
  0x3a   :  { %169 = vlog2.f32 %v73_v10 }
  0x3b   :  { %171 = vlog2.f32 %v74_v11 }
  0x44   :  { %v170_v15 = vpop.eup %169 }
  0x45   :  { %v172_v17 = vpop.eup %171  ;;  %v76_v18 = vmul.f32 0.6931472, %v170_v15 }
  0x46   :  { %v78_v19 = vmul.f32 0.6931472, %v172_v17 }
  0x47   :  { %v79_v20 = vadd.f32 %v76_v18, %v71_v14 }
  0x48   :  { %v80_v21 = vadd.f32 %v78_v19, %v72_v16 }
  0x49   :  { %v81_v22 = vsub.f32 0.0, %v79_v20  ;;  %v83_v41 = vsub.f32 %v69_v12, %v79_v20 }
  0x4a   :  { %v82_v23 = vsub.f32 0.0, %v80_v21  ;;  %v84_v45 = vsub.f32 %v70_v13, %v80_v21 }
  0x4b   :  { %v85_v24 = vmul.f32 1.442695, %v81_v22 }
  0x4c   :  { %v87_v25 = vmul.f32 1.442695, %v82_v23 }
  0x4d   :  { %173 = vpow2.f32 %v85_v24 }
  0x4e   :  { %175 = vpow2.f32 %v87_v25 }
  0x57   :  { %v174_v31 = vpop.eup %173 }
  0x58   :  { %v176_v32 = vpop.eup %175  ;;  %v89_v33 = vsub.f32 1.0, %v174_v31  ;;  %v93_v34 = vmul.f32 %v174_v31, %v174_v31 }
  0x59   :  { %v90_v37 = vsub.f32 1.0, %v176_v32  ;;  %v94_v38 = vmul.f32 %v176_v32, %v176_v32 }
  0x5a   :  { %v91_v42 = vmul.f32 %v89_v33, %v89_v33  ;;  %v101_v43 = vmul.f32 -0.4, %v93_v34 }
  0x5b   :  { %v92_v46 = vmul.f32 %v90_v37, %v90_v37  ;;  %v102_v47 = vmul.f32 -0.4, %v94_v38 }
  0x5c   :  { %v95_v48 = vmul.f32 -0.6, %v91_v42  ;;  %v105_v49 = vmul.f32 %v103_v35, %v101_v43 }
  0x5d   :  { %v96_v50 = vmul.f32 -0.6, %v92_v46  ;;  %v106_v51 = vmul.f32 %v104_v39, %v102_v47 }
  0x5e   :  { %v97_v53 = vmul.f32 %v95_v48, %v59_v28  ;;  %v107_v54 = vmul.f32 %v105_v49, %v83_v41 }
  0x5f   :  { %v98_v56 = vmul.f32 %v96_v50, %v60_v29  ;;  %v108_v57 = vmul.f32 %v106_v51, %v84_v45 }
  0x60   :  { %v99_v58 = vmul.f32 %v97_v53, %v81_v22 }
  0x61   :  { %v100_v59 = vmul.f32 %v98_v56, %v82_v23 }
  0x62   :  { %v109_v60 = vadd.f32 %v107_v54, %v99_v58 }
  0x63   :  { %v110_v61 = vadd.f32 %v108_v57, %v100_v59 }
  0x64   :  { %v127_v62 = vsel %vm125_vm0, %v109_v60, 0.0 }
  0x65   :  { %v128_v63 = vsel %vm126_vm1, %v110_v61, 0.0 }
  0x66   :  { %v130_v0 = vadd.f32 %v128_v63, %v127_v62 }
  0x68   :  { %v137_v1 = vrot.slane %v130_v0, 4 }
  0x6a   :  { %v138_v2 = vadd.f32 %v137_v1, %v130_v0 }
  0x6c   :  { %v139_v3 = vrot.slane %v138_v2, 2 }
  0x6e   :  { %v140_v4 = vadd.f32 %v139_v3, %v138_v2 }
  0x70   :  { %v141_v5 = vrot.slane %v140_v4, 1 }
  0x72   :  { %v142_v6 = vadd.f32 %v141_v5, %v140_v4 }
  0x74   :  { %143 = vst [vmem:[#allocation8] sm:$0x1] %v142_v6 }
  0x75   :  { %232 = shalt.err (!%p229_p6)
}
  0x76   :  { %s233_s11 = scalar_lea.hbm %s307_s2, 16 }
  0x77   :  { %p234_p7 = scmp.ne.s32.totalorder %s307_s2, %s233_s11  ;;  %p237_p8 = scmp.lt.u32.totalorder %s233_s11, %s307_s2 }
  0x79   :  { %p239_p9 = pnand %p237_p8, %p234_p7 }
  0x7b   :  { %242 = shalt.err (!%p239_p9)
}
  0x7c   :  { %153 = dma.vmem_to_hbm [thread:$0]  %s151_s6, 16, %s307_s2, [#allocation5]  }
  0x7d   :  { %247 = dma.done.wait [#allocation5], 16  }
  0x7e   :  { %248 = vsyncadd [#allocation5], 4294967280 }
  0x7f   :  { %157 = vsyncpa [#allocation4], 1 }
  0x80   :  { %158 = vsyncpa [#allocation7], 1 }
  0x81   :  { %159 = vsyncpa [#allocation5], 1 }

</bundles_post_ra>
